<compile_context>
chip_gen: v7x
topology: tpu7x:2x2x1
jax: 0.10.0
libtpu: 0.0.40
codegen_flags: <defaults>
</compile_context>

<pallas_src>
import jax
import jax.numpy as jnp
from jax import lax
from jax.experimental import pallas as pl
from jax.experimental.pallas import tpu as pltpu


def _f_noise(e):
    # f(eps) = sign(eps) * sqrt(|eps|)  (factored-Gaussian noise transform)
    return jnp.sign(e) * jnp.sqrt(jnp.abs(e))


def _round_up(v, m):
    return (v + m - 1) // m * m


def _pad2(a, rows, cols):
    pr, pc = rows - a.shape[0], cols - a.shape[1]
    if pr == 0 and pc == 0:
        return a
    return jnp.pad(a, ((0, pr), (0, pc)))


# ----------------------------------------------------------------------------
# Kernel
# ----------------------------------------------------------------------------
def noisy_linear_kernel(x_ref, fep_ref, wm_ref, wv_ref, feb_ref, bias_ref, o_ref):
    # x_ref    : (tm, tk)  bf16 input tile
    # fep_ref  : (1,  tk)  f32  f(eps_p), lane-dense along In
    # wm_ref   : (tn, tk)  bf16 weight_mean tile, NATIVE (Out, In) layout
    # wv_ref   : (tn, tk)  bf16 weight_var  tile, NATIVE (Out, In) layout
    # feb_ref  : (1,  tn)  f32  f(eps_b)            (k-invariant -> resident)
    # bias_ref : (1,  tn)  f32  bias_mean + bias_var * f(eps_b)  (precomposed)
    # o_ref    : (tm, tn)  f32  output block; K-resident, used as the accumulator
    k = pl.program_id(2)

    @pl.when(k == 0)
    def _():
        # Fold the bias into the accumulator init -> no finalize step needed.
        o_ref[...] = jnp.broadcast_to(bias_ref[...], o_ref.shape)

    dn = (((1,), (1,)), ((), ()))               # contract last (lane) dim of both
    xt = x_ref[...]                             # (tm, tk) bf16
    xv = (xt * fep_ref[...]).astype(xt.dtype)   # f32 broadcast-mul, back to bf16

    y_mean = lax.dot_general(xt, wm_ref[...], dn, preferred_element_type=jnp.float32)
    y_var = lax.dot_general(xv, wv_ref[...], dn, preferred_element_type=jnp.float32)
    o_ref[...] += y_mean + feb_ref[...] * y_var


# ----------------------------------------------------------------------------
# One-time parameter preparation (hoist out of the per-call path)
# ----------------------------------------------------------------------------
def prepare_noisy_linear_params(weight_mean, weight_var, bias_mean, bias_var,
                                *, tn=None, tk=None, weight_dtype=jnp.bfloat16):
    """Pad + cast the constant parameters ONCE. Weights keep their native
    (Out, In) layout -- no transpose, ever."""
    Out, In = weight_mean.shape
    out128 = _round_up(Out, 128)
    in128 = _round_up(In, 128)

    if tn is None:
        if out128 <= 256:
            tn = out128
        elif out128 <= 1024:
            tn = 256      # keep >= 2 programs on the N axis (v7x 2-TC occupancy)
        else:
            tn = 512
    else:
        tn = _round_up(tn, 128)
    if tk is None:
        tk = in128 if in128 <= 2048 else 1024
    else:
        tk = _round_up(tk, 128)

    Out_pad = _round_up(Out, tn)
    In_pad = _round_up(In, tk)

    wm_p = _pad2(weight_mean.astype(weight_dtype), Out_pad, In_pad)   # (Out_pad, In_pad)
    wv_p = _pad2(weight_var.astype(weight_dtype), Out_pad, In_pad)
    bm_p = _pad2(bias_mean.astype(jnp.float32).reshape(1, Out), 1, Out_pad)
    bv_p = _pad2(bias_var.astype(jnp.float32).reshape(1, Out), 1, Out_pad)

    return dict(wm=wm_p, wv=wv_p, bias_mean=bm_p, bias_var=bv_p,
                out_features=Out, in_features=In,
                out_pad=Out_pad, in_pad=In_pad, tn=tn, tk=tk,
                weight_dtype=weight_dtype)


# ----------------------------------------------------------------------------
# Per-call apply
# ----------------------------------------------------------------------------
def noisy_linear_apply(x, params, eps_p, eps_b, *, tm=None,
                       deep_weight_pipeline=False):
    """x: (B, In); eps_p: (In,); eps_b: (Out,).  Returns f32 (B, Out)."""
    B, In = x.shape
    assert In == params["in_features"]
    Out = params["out_features"]
    Out_pad, In_pad = params["out_pad"], params["in_pad"]
    tn, tk = params["tn"], params["tk"]
    wdt = params["weight_dtype"]

    if tm is None:
        tm = 128 if B >= 128 else _round_up(B, 8)
    else:
        tm = _round_up(tm, 8)
    B_pad = _round_up(B, tm)

    # Cheap per-call work: noise transform, bias composition, x pad/cast.
    fep = _pad2(_f_noise(eps_p.astype(jnp.float32)).reshape(1, In), 1, In_pad)
    feb = _pad2(_f_noise(eps_b.astype(jnp.float32)).reshape(1, Out), 1, Out_pad)
    bias = params["bias_mean"] + params["bias_var"] * feb            # (1, Out_pad) f32
    x_p = _pad2(x.astype(wdt), B_pad, In_pad)                        # bf16 stream

    grid = (B_pad // tm, Out_pad // tn, In_pad // tk)

    w_kwargs = {}
    if deep_weight_pipeline:
        # 3-deep buffering on the weight streams for small-tm / exposed-DMA configs.
        w_kwargs["pipeline_mode"] = pl.Buffered(3)
    wm_spec = pl.BlockSpec((tn, tk), lambda i, j, k: (j, k), **w_kwargs)
    wv_spec = pl.BlockSpec((tn, tk), lambda i, j, k: (j, k), **w_kwargs)

    out_padded = pl.pallas_call(
        noisy_linear_kernel,
        out_shape=jax.ShapeDtypeStruct((B_pad, Out_pad), jnp.float32),
        grid_spec=pltpu.PrefetchScalarGridSpec(
            num_scalar_prefetch=0,
            grid=grid,
            in_specs=[
                pl.BlockSpec((tm, tk), lambda i, j, k: (i, k)),   # x (bf16)
                pl.BlockSpec((1, tk), lambda i, j, k: (0, k)),    # f(eps_p) (f32)
                wm_spec,                                          # weight_mean, native layout
                wv_spec,                                          # weight_var,  native layout
                pl.BlockSpec((1, tn), lambda i, j, k: (0, j)),    # f(eps_b)  (k-invariant)
                pl.BlockSpec((1, tn), lambda i, j, k: (0, j)),    # composed bias (k-invariant)
            ],
            out_specs=pl.BlockSpec((tm, tn), lambda i, j, k: (i, j)),
        ),
        compiler_params=pltpu.CompilerParams(
            dimension_semantics=("parallel", "parallel", "arbitrary"),
            vmem_limit_bytes=48 * 1024 * 1024),   # headroom for big tiles; < v7x 64 MiB
    )(x_p, fep, params["wm"], params["wv"], feb, bias)

    return out_padded[:B, :Out]


def noisy_linear(x, weight_mean, weight_var, bias_mean, bias_var, eps_p, eps_b,
                 **kwargs):
    """One-shot convenience wrapper. In production, call
    prepare_noisy_linear_params() once and reuse it across forward passes."""
    params = prepare_noisy_linear_params(weight_mean, weight_var, bias_mean,
                                         bias_var,
                                         tn=kwargs.pop("tn", None),
                                         tk=kwargs.pop("tk", None))
    return noisy_linear_apply(x, params, eps_p, eps_b, **kwargs)


# ----------------------------------------------------------------------------
# References
# ----------------------------------------------------------------------------
def noisy_linear_ref(x, weight_mean, weight_var, bias_mean, bias_var, eps_p, eps_b):
    """Pure-JAX f32 reference mirroring the PyTorch forward exactly."""
    ep = _f_noise(eps_p.reshape(-1, 1))                    # (In, 1)
    eb = _f_noise(eps_b.reshape(-1, 1))                    # (Out, 1)
    weights = weight_mean + weight_var * (ep * eb.T).T     # (Out, In)
    biases = (bias_mean + bias_var * eb.squeeze())[None]   # (1, Out)
    return x @ weights.T + biases


def noisy_linear_ref_matched(x, weight_mean, weight_var, bias_mean, bias_var,
                             eps_p, eps_b):
    """Reference using the same bf16 streaming / f32 accumulation as the kernel."""
    fep = _f_noise(eps_p.astype(jnp.float32))[None, :]     # (1, In)
    feb = _f_noise(eps_b.astype(jnp.float32))[None, :]     # (1, Out)
    bias = (bias_mean.astype(jnp.float32)
            + bias_var.astype(jnp.float32) * feb[0])[None, :]
    xb = x.astype(jnp.bfloat16)
    wm = weight_mean.astype(jnp.bfloat16)
    wv = weight_var.astype(jnp.bfloat16)
    xv = (xb.astype(jnp.float32) * fep).astype(jnp.bfloat16)
    dn = (((1,), (1,)), ((), ()))
    ym = lax.dot_general(xb, wm, dn, preferred_element_type=jnp.float32)
    yv = lax.dot_general(xv, wv, dn, preferred_element_type=jnp.float32)
    return ym + feb * yv + bias


def _make_inputs(key, batch, input_size, output_size, std):
    k_x, k_wm, k_bm, k_ep, k_eb = jax.random.split(key, 5)
    amp = 1.0 / jnp.sqrt(jnp.float32(input_size))
    weight_mean = 2 * amp * jax.random.uniform(
        k_wm, (output_size, input_size), jnp.float32) - amp
    weight_var = jnp.full((output_size, input_size),
                          std / jnp.sqrt(jnp.float32(input_size)), jnp.float32)
    bias_mean = 2 * amp * jax.random.uniform(k_bm, (output_size,), jnp.float32) - amp
    bias_var = jnp.full((output_size,),
                        std / jnp.sqrt(jnp.float32(input_size)), jnp.float32)
    eps_p = jax.random.normal(k_ep, (input_size,), jnp.float32)
    eps_b = jax.random.normal(k_eb, (output_size,), jnp.float32)
    x = jax.random.normal(k_x, (batch, input_size), jnp.float32)
    return x, weight_mean, weight_var, bias_mean, bias_var, eps_p, eps_b


if __name__ == "__main__":
    key = jax.random.PRNGKey(0)
    k1, k2 = jax.random.split(key)

    # --- Test 1: small module-consistent shapes (single-tile grid) ----------
    args1 = _make_inputs(k1, batch=8, input_size=32, output_size=64, std=0.5)
    x1, wm1, wv1, bm1, bv1, ep1, eb1 = args1
    params1 = prepare_noisy_linear_params(wm1, wv1, bm1, bv1)   # one-time prep
    out1 = jax.block_until_ready(noisy_linear_apply(x1, params1, ep1, eb1))
    assert out1.shape == (8, 64)
    assert jnp.allclose(out1, noisy_linear_ref_matched(*args1),
                        atol=5e-3, rtol=5e-3), "mismatch vs matched-precision ref (small)"
    assert jnp.allclose(out1, noisy_linear_ref(*args1),
                        atol=6e-2, rtol=6e-2), "mismatch vs f32 ref (small)"

    # --- Test 2: multi-tile N/K grid + padding in every dim ------------------
    args2 = _make_inputs(k2, batch=16, input_size=640, output_size=272, std=0.4)
    x2, wm2, wv2, bm2, bv2, ep2, eb2 = args2
    params2 = prepare_noisy_linear_params(wm2, wv2, bm2, bv2, tk=256)  # grid (1, 2, 3)
    out2 = jax.block_until_ready(noisy_linear_apply(x2, params2, ep2, eb2))
    assert out2.shape == (16, 272)
    assert jnp.allclose(out2, noisy_linear_ref_matched(*args2),
                        atol=5e-3, rtol=5e-3), "mismatch vs matched-precision ref (tiled)"
    assert jnp.allclose(out2, noisy_linear_ref(*args2),
                        atol=6e-2, rtol=6e-2), "mismatch vs f32 ref (tiled)"

    print("KERNEL_OK")
</pallas_src>

<mosaic_0001>
module attributes {stable_mosaic.version = 11 : i64} {
  func.func @noisy_linear_kernel(%arg0: i32, %arg1: i32, %arg2: i32, %arg3: memref<8x128xbf16, #tpu.memory_space<vmem>>, %arg4: memref<1x128xf32, #tpu.memory_space<vmem>>, %arg5: memref<128x128xbf16, #tpu.memory_space<vmem>>, %arg6: memref<128x128xbf16, #tpu.memory_space<vmem>>, %arg7: memref<1x128xf32, #tpu.memory_space<vmem>>, %arg8: memref<1x128xf32, #tpu.memory_space<vmem>>, %arg9: memref<8x128xf32, #tpu.memory_space<vmem>>) attributes {dimension_semantics = [#tpu.dimension_semantics<parallel>, #tpu.dimension_semantics<parallel>, #tpu.dimension_semantics<arbitrary>], iteration_bounds = array<i64: 1, 1, 1>, scalar_prefetch = 0 : i64, scratch_operands = 0 : i64, tpu.core_type = #tpu.core_type<tc>, window_params = [{transform_indices = @transform_0, window_bounds = array<i64: 8, 128>}, {transform_indices = @transform_1, window_bounds = array<i64: 1, 128>}, {transform_indices = @transform_2, window_bounds = array<i64: 128, 128>}, {transform_indices = @transform_3, window_bounds = array<i64: 128, 128>}, {transform_indices = @transform_4, window_bounds = array<i64: 1, 128>}, {transform_indices = @transform_5, window_bounds = array<i64: 1, 128>}, {transform_indices = @transform_6, window_bounds = array<i64: 8, 128>}]} {
    %c0_i32 = arith.constant 0 : i32
    %0 = arith.cmpi eq, %arg2, %c0_i32 : i32
    %1 = arith.extui %0 : i1 to i32
    %c0_i32_0 = arith.constant 0 : i32
    %2 = arith.cmpi ne, %1, %c0_i32_0 : i32
    scf.if %2 {
      %c0_15 = arith.constant 0 : index
      %c0_16 = arith.constant 0 : index
      %20 = vector.load %arg8[%c0_15, %c0_16] : memref<1x128xf32, #tpu.memory_space<vmem>>, vector<1x128xf32>
      %21 = vector.shape_cast %20 : vector<1x128xf32> to vector<1x128xf32>
      %22 = vector.broadcast %21 : vector<1x128xf32> to vector<8x128xf32>
      %c0_17 = arith.constant 0 : index
      %c0_18 = arith.constant 0 : index
      %23 = vector.load %arg9[%c0_17, %c0_18] : memref<8x128xf32, #tpu.memory_space<vmem>>, vector<8x128xf32>
      tpu.vector_store %arg9[%c0_17, %c0_18], %22 {strides = array<i32>} : memref<8x128xf32, #tpu.memory_space<vmem>>, vector<8x128xf32>,
    } else {
    }
    %c0 = arith.constant 0 : index
    %c0_1 = arith.constant 0 : index
    %3 = vector.load %arg3[%c0, %c0_1] : memref<8x128xbf16, #tpu.memory_space<vmem>>, vector<8x128xbf16>
    %c0_2 = arith.constant 0 : index
    %c0_3 = arith.constant 0 : index
    %4 = vector.load %arg4[%c0_2, %c0_3] : memref<1x128xf32, #tpu.memory_space<vmem>>, vector<1x128xf32>
    %5 = arith.extf %3 : vector<8x128xbf16> to vector<8x128xf32>
    %6 = vector.broadcast %4 : vector<1x128xf32> to vector<8x128xf32>
    %7 = arith.mulf %5, %6 : vector<8x128xf32>
    %8 = arith.truncf %7 : vector<8x128xf32> to vector<8x128xbf16>
    %c0_4 = arith.constant 0 : index
    %c0_5 = arith.constant 0 : index
    %9 = vector.load %arg5[%c0_4, %c0_5] : memref<128x128xbf16, #tpu.memory_space<vmem>>, vector<128x128xbf16>
    %cst = arith.constant dense<0.000000e+00> : vector<8x128xf32>
    %10 = tpu.matmul %3, %9, %cst {dimension_numbers = #tpu.dot_dimension_numbers<[1], [1], [0], [0], [0, 0, 1, 0], [], []>} : vector<8x128xbf16>, vector<128x128xbf16>, vector<8x128xf32> -> vector<8x128xf32>
    %c0_6 = arith.constant 0 : index
    %c0_7 = arith.constant 0 : index
    %11 = vector.load %arg6[%c0_6, %c0_7] : memref<128x128xbf16, #tpu.memory_space<vmem>>, vector<128x128xbf16>
    %cst_8 = arith.constant dense<0.000000e+00> : vector<8x128xf32>
    %12 = tpu.matmul %8, %11, %cst_8 {dimension_numbers = #tpu.dot_dimension_numbers<[1], [1], [0], [0], [0, 0, 1, 0], [], []>} : vector<8x128xbf16>, vector<128x128xbf16>, vector<8x128xf32> -> vector<8x128xf32>
    %c0_9 = arith.constant 0 : index
    %c0_10 = arith.constant 0 : index
    %13 = vector.load %arg9[%c0_9, %c0_10] : memref<8x128xf32, #tpu.memory_space<vmem>>, vector<8x128xf32>
    %c0_11 = arith.constant 0 : index
    %c0_12 = arith.constant 0 : index
    %14 = vector.load %arg7[%c0_11, %c0_12] : memref<1x128xf32, #tpu.memory_space<vmem>>, vector<1x128xf32>
    %15 = vector.broadcast %14 : vector<1x128xf32> to vector<8x128xf32>
    %16 = arith.mulf %15, %12 : vector<8x128xf32>
    %17 = arith.addf %10, %16 : vector<8x128xf32>
    %18 = arith.addf %13, %17 : vector<8x128xf32>
    %c0_13 = arith.constant 0 : index
    %c0_14 = arith.constant 0 : index
    %19 = vector.load %arg9[%c0_13, %c0_14] : memref<8x128xf32, #tpu.memory_space<vmem>>, vector<8x128xf32>
    tpu.vector_store %arg9[%c0_13, %c0_14], %18 {strides = array<i32>} : memref<8x128xf32, #tpu.memory_space<vmem>>, vector<8x128xf32>,
    return
  }
  func.func @transform_0(%arg0: i32, %arg1: i32, %arg2: i32) -> (i32, i32) {
    %c0_i32 = arith.constant 0 : i32
    return %arg0, %arg2 : i32, i32
  }
  func.func @transform_1(%arg0: i32, %arg1: i32, %arg2: i32) -> (i32, i32) {
    %c0_i32 = arith.constant 0 : i32
    %c0_i32_0 = arith.constant 0 : i32
    return %c0_i32, %arg2 : i32, i32
  }
  func.func @transform_2(%arg0: i32, %arg1: i32, %arg2: i32) -> (i32, i32) {
    %c0_i32 = arith.constant 0 : i32
    return %arg1, %arg2 : i32, i32
  }
  func.func @transform_3(%arg0: i32, %arg1: i32, %arg2: i32) -> (i32, i32) {
    %c0_i32 = arith.constant 0 : i32
    return %arg1, %arg2 : i32, i32
  }
  func.func @transform_4(%arg0: i32, %arg1: i32, %arg2: i32) -> (i32, i32) {
    %c0_i32 = arith.constant 0 : i32
    %c0_i32_0 = arith.constant 0 : i32
    return %c0_i32, %arg1 : i32, i32
  }
  func.func @transform_5(%arg0: i32, %arg1: i32, %arg2: i32) -> (i32, i32) {
    %c0_i32 = arith.constant 0 : i32
    %c0_i32_0 = arith.constant 0 : i32
    return %c0_i32, %arg1 : i32, i32
  }
  func.func @transform_6(%arg0: i32, %arg1: i32, %arg2: i32) -> (i32, i32) {
    %c0_i32 = arith.constant 0 : i32
    return %arg0, %arg1 : i32, i32
  }
}

</mosaic_0001>

<bundles_post_ra>
// kernel: tpu_custom_call.1
= control target key start
LH: loop header
LB: loop body
LE: loop exit
PB: predicated region body
PF: predicated region fallthrough
CT: control target
= control target key end

     0   :  { %11 = vsyncpa [#allocation3], 0  ;;  %s623_s0 = inlined_call_operand.hbm [shape: bf16[8,128], index: 0, kind: input, shape index: {}]   ;;  %s624_s1 = inlined_call_operand.vmem [shape: f32[1,128], index: 1, kind: input, shape index: {}]   ;;  %s625_s2 = inlined_call_operand.hbm [shape: bf16[128,128], index: 2, kind: input, shape index: {}]   ;;  %s626_s3 = inlined_call_operand.hbm [shape: bf16[128,128], index: 3, kind: input, shape index: {}]   ;;  %s627_s4 = inlined_call_operand.vmem [shape: f32[1,128], index: 4, kind: input, shape index: {}]   ;;  %s628_s5 = inlined_call_operand.vmem [shape: f32[1,128], index: 5, kind: input, shape index: {}]   ;;  %s629_s6 = inlined_call_operand.hbm [shape: f32[8,128], index: 6, kind: output, shape index: {}]  }
   0x1   :  { %12 = vsyncpa [#allocation6], 0 }
   0x2   :  { %13 = vsyncpa [#allocation4], 0  ;;  %s517_s21 = smov [#allocation5]   ;;  %s423_s25 = scalar_lea.hbm %s625_s2, 1024 }
   0x3   :  { %s31_s22 = sshll.u32 %s517_s21, 4  ;;  %p424_p0 = scmp.ne.s32.totalorder %s625_s2, %s423_s25  ;;  %s32_s22 = int_to_ptr.vmem [resolvable:$true] %s31_s22 }
   0x4   :  { %p427_p1 = scmp.lt.u32.totalorder %s423_s25, %s625_s2 }
   0x6   :  { %p429_p2 = pnand %p427_p1, %p424_p0 }
   0x8   :  { %432 = shalt.err (!%p429_p2)
}
   0x9   :  { %s433_s30 = scalar_lea.vmem %s32_s22, 1024  ;;  %p438_p4 = scmp.lt.s32.totalorder %s32_s22, %s32_s22 }
   0xa   :  { %p434_p3 = scmp.ne.s32.totalorder %s32_s22, %s433_s30  ;;  %p439_p5 = scmp.lt.s32.totalorder %s433_s30, %s433_s30 }
   0xc   :  { %p440_p6 = por %p439_p5, %p438_p4 }
   0xe   :  { %p441_p7 = pnand %p440_p6, %p434_p3 }
  0x10   :  { %444 = shalt.err (!%p441_p7)
}
  0x11   :  { %s518_s7 = smov 64   ;;  %s519_s8 = smov 4  }
  0x12   :  { %37 = dma.hbm_to_vmem [thread:$0]  %s625_s2, 1024, %s32_s22, [#allocation6], %s518_s7, %s518_s7, %s519_s8  }
  0x13   :  { %s520_s11 = smov [#allocation2]   ;;  %s521_s13 = smov [#allocation7]  }
  0x14   :  { %s20_s12 = sshll.u32 %s520_s11, 4  ;;  %s43_s14 = sshll.u32 %s521_s13, 4  ;;  %s21_s12 = int_to_ptr.vmem [resolvable:$true] %s20_s12  ;;  %s44_s14 = int_to_ptr.vmem [resolvable:$true] %s43_s14 }
  0x15   :  { %s445_s17 = scalar_lea.hbm %s623_s0, 64 }
  0x16   :  { %p446_p8 = scmp.ne.s32.totalorder %s623_s0, %s445_s17  ;;  %p449_p9 = scmp.lt.u32.totalorder %s445_s17, %s623_s0 }
  0x18   :  { %p451_p10 = pnand %p449_p9, %p446_p8 }
  0x1a   :  { %454 = shalt.err (!%p451_p10)
}
  0x1b   :  { %s455_s2 = scalar_lea.vmem %s21_s12, 64  ;;  %p460_p12 = scmp.lt.s32.totalorder %s21_s12, %s21_s12 }
  0x1c   :  { %p456_p11 = scmp.ne.s32.totalorder %s21_s12, %s455_s2  ;;  %p461_p13 = scmp.lt.s32.totalorder %s455_s2, %s455_s2 }
  0x1e   :  { %p462_p0 = por %p461_p13, %p460_p12 }
  0x20   :  { %p463_p1 = pnand %p462_p0, %p456_p11 }
  0x22   :  { %466 = shalt.err (!%p463_p1)
}
  0x23   :  { %23 = dma.hbm_to_vmem [thread:$0]  %s623_s0, 64, %s21_s12, [#allocation3]  }
  0x24   :  { %s467_s26 = scalar_lea.hbm %s626_s3, 1024 }
  0x25   :  { %p468_p2 = scmp.ne.s32.totalorder %s626_s3, %s467_s26  ;;  %p471_p3 = scmp.lt.u32.totalorder %s467_s26, %s626_s3 }
  0x27   :  { %p473_p4 = pnand %p471_p3, %p468_p2 }
  0x29   :  { %476 = shalt.err (!%p473_p4)
}
  0x2a   :  { %s477_s9 = scalar_lea.vmem %s44_s14, 1024  ;;  %p482_p6 = scmp.lt.s32.totalorder %s44_s14, %s44_s14 }
  0x2b   :  { %p478_p5 = scmp.ne.s32.totalorder %s44_s14, %s477_s9  ;;  %p483_p7 = scmp.lt.s32.totalorder %s477_s9, %s477_s9 }
  0x2d   :  { %p484_p8 = por %p483_p7, %p482_p6 }
  0x2f   :  { %p485_p9 = pnand %p484_p8, %p478_p5 }
  0x31   :  { %488 = shalt.err (!%p485_p9)
}
  0x32   :  { %49 = dma.hbm_to_vmem [thread:$0]  %s626_s3, 1024, %s44_s14, [#allocation6], %s518_s7, %s518_s7, %s519_s8  }
  0x33   :  { %511 = dma.done.wait [#allocation3], 64  }
  0x34   :  { %512 = vsyncadd [#allocation3], 4294967232 }
  0x35   :  { %513 = dma.done.wait [#allocation6], 2048  }
  0x36   :  { %514 = vsyncadd [#allocation6], 4294965248  ;;  %v522_v0 = vmov 0.0   ;;  %vm523_vm0 = vmmov 0   ;;  %v407_v1 = vld [vmem:[#allocation7] sm:$0xff]   ;;  %v409_v3 = vld [vmem:[#allocation7 + $0x8] sm:$0xff]  }
  0x37   :  { %359 = vmatprep.subr.bf16.mxu0 %v522_v0  ;;  %379 = vmatprep.subr.bf16.mxu1 %v522_v0  ;;  %v408_v2 = vld [vmem:[#allocation5] sm:$0xff]   ;;  %v410_v4 = vld [vmem:[#allocation5 + $0x8] sm:$0xff]   ;;  %v411_v5 = vld [vmem:[#allocation7 + $0x10] sm:$0xff]  }
  0x38   :  { %375 = vmatprep.mubr.msk.bf16.mxu0 %vm523_vm0, %v522_v0  ;;  %395 = vmatprep.mubr.msk.bf16.mxu1 %vm523_vm0, %v522_v0  ;;  %v412_v6 = vld [vmem:[#allocation5 + $0x10] sm:$0xff]   ;;  %v413_v7 = vld [vmem:[#allocation7 + $0x18] sm:$0xff]   ;;  %v415_v9 = vld [vmem:[#allocation7 + $0x20] sm:$0xff]  }
  0x39   :  { %360 = vmatpush3.bf16.xpose.msra.mxu0 %v407_v1  ;;  %380 = vmatpush3.bf16.xpose.msra.mxu1 %v408_v2  ;;  %v414_v8 = vld [vmem:[#allocation5 + $0x18] sm:$0xff]   ;;  %v416_v10 = vld [vmem:[#allocation5 + $0x20] sm:$0xff]   ;;  %v417_v11 = vld [vmem:[#allocation7 + $0x28] sm:$0xff]  }
  0x3a   :  { %361 = vmatprep.subr.bf16.mxu0 %v522_v0  ;;  %381 = vmatprep.subr.bf16.mxu1 %v522_v0  ;;  %v418_v12 = vld [vmem:[#allocation5 + $0x28] sm:$0xff]   ;;  %v419_v13 = vld [vmem:[#allocation7 + $0x30] sm:$0xff]   ;;  %v76_v15 = vld [vmem:[#allocation2] sm:$0xf] }
  0x3b   :  { %v420_v14 = vld [vmem:[#allocation5 + $0x30] sm:$0xff]   ;;  %v78_v16 = vunpack.c.l.bf16 %v76_v15  ;;  %v421_v17 = vld [vmem:[#allocation7 + $0x38] sm:$0xff]  }
  0x3c   :  { %v323_v18 = vld [vmem:[%s624_s1] ss:$0 sm:$0xff]  ;;  %s524_s1 = smov [#allocation8]  }
  0x3d   :  { %v422_v19 = vld [vmem:[#allocation5 + $0x38] sm:$0xff]   ;;  %v85_v20 = vmul.f32 %v323_v18, %v78_v16  ;;  %s312_s14 = sshll.u32 %s524_s1, 4  ;;  %s313_s14 = int_to_ptr.vmem [resolvable:$true] %s312_s14 }
  0x3e   :  { %v332_v22 = vld [vmem:[%s627_s4] ss:$0 sm:$0xff]  ;;  %s489_s4 = scalar_lea.vmem %s313_s14, 128  ;;  %p494_p11 = scmp.lt.s32.totalorder %s313_s14, %s313_s14 }
  0x3f   :  { %v86_v21 = vpack.c.bf16 %v85_v20, %v85_v20  ;;  %v322_v27 = vld [vmem:[%s628_s5] ss:$0 sm:$0xff]  ;;  %p490_p10 = scmp.ne.s32.totalorder %s313_s14, %s489_s4  ;;  %p495_p12 = scmp.lt.s32.totalorder %s489_s4, %s489_s4 }
  0x41   :  { %362 = vmatpush3.bf16.xpose.msra.mxu0 %v409_v3  ;;  %382 = vmatpush3.bf16.xpose.msra.mxu1 %v410_v4  ;;  %p496_p13 = por %p495_p12, %p494_p11 }
  0x42   :  { %363 = vmatprep.subr.bf16.mxu0 %v522_v0  ;;  %383 = vmatprep.subr.bf16.mxu1 %v522_v0 }
  0x43   :  { %p497_p0 = pnand %p496_p13, %p490_p10 }
  0x49   :  { %364 = vmatpush3.bf16.xpose.msra.mxu0 %v411_v5  ;;  %384 = vmatpush3.bf16.xpose.msra.mxu1 %v412_v6 }
  0x4a   :  { %365 = vmatprep.subr.bf16.mxu0 %v522_v0  ;;  %385 = vmatprep.subr.bf16.mxu1 %v522_v0 }
  0x51   :  { %366 = vmatpush3.bf16.xpose.msra.mxu0 %v413_v7  ;;  %386 = vmatpush3.bf16.xpose.msra.mxu1 %v414_v8 }
  0x52   :  { %367 = vmatprep.subr.bf16.mxu0 %v522_v0  ;;  %387 = vmatprep.subr.bf16.mxu1 %v522_v0 }
  0x59   :  { %368 = vmatpush3.bf16.xpose.msra.mxu0 %v415_v9  ;;  %388 = vmatpush3.bf16.xpose.msra.mxu1 %v416_v10 }
  0x5a   :  { %369 = vmatprep.subr.bf16.mxu0 %v522_v0  ;;  %389 = vmatprep.subr.bf16.mxu1 %v522_v0 }
  0x61   :  { %370 = vmatpush3.bf16.xpose.msra.mxu0 %v417_v11  ;;  %390 = vmatpush3.bf16.xpose.msra.mxu1 %v418_v12 }
  0x62   :  { %371 = vmatprep.subr.bf16.mxu0 %v522_v0  ;;  %391 = vmatprep.subr.bf16.mxu1 %v522_v0 }
  0x69   :  { %372 = vmatpush3.bf16.xpose.msra.mxu0 %v419_v13  ;;  %392 = vmatpush3.bf16.xpose.msra.mxu1 %v420_v14 }
  0x6a   :  { %373 = vmatprep.subr.bf16.mxu0 %v522_v0  ;;  %393 = vmatprep.subr.bf16.mxu1 %v522_v0 }
  0x71   :  { %374 = vmatpush3.bf16.xpose.msra.mxu0 %v421_v17  ;;  %394 = vmatpush3.bf16.xpose.msra.mxu1 %v422_v19 }
  0x78   :  { %376 = vmatmul.mubr.bf16.vlgmr.msra.gmra.mrb[0].mxu0 %v86_v21  ;;  %396 = vmatmul.mubr.bf16.vlgmr.msra.gmra.mrb[0].mxu1 %v76_v15 }
 0x14b   :  { %v201_v23 = vpop.f32.mrb[0].mxu0  ;;  %v298_v25 = vpop.f32.mrb[0].mxu1 }
 0x14c   :  { %v215_v24 = vmul.f32 %v332_v22, %v201_v23  ;;  %v377_v26 = vpop.f32.mrb[1].mxu0  ;;  %v397_v28 = vpop.f32.mrb[1].mxu1 }
 0x14d   :  { %v204_v29 = vpop.f32.mrb[2].mxu0  ;;  %v301_v31 = vpop.f32.mrb[2].mxu1 }
 0x14e   :  { %v299_v30 = vadd.f32 %v298_v25, %v215_v24  ;;  %v378_v32 = vpop.f32.mrb[3].mxu0  ;;  %v398_v33 = vpop.f32.mrb[3].mxu1 }
 0x150   :  { %v304_v34 = vadd.f32 %v322_v27, %v299_v30 }
 0x152   :  { %305 = vst [vmem:[#allocation8] sm:$0xff] %v304_v34 }
 0x153   :  { %500 = shalt.err (!%p497_p0)
}
 0x154   :  { %s501_s16 = scalar_lea.hbm %s629_s6, 128 }
 0x155   :  { %p502_p1 = scmp.ne.s32.totalorder %s629_s6, %s501_s16  ;;  %p505_p2 = scmp.lt.u32.totalorder %s501_s16, %s629_s6 }
 0x157   :  { %p507_p3 = pnand %p505_p2, %p502_p1 }
 0x159   :  { %510 = shalt.err (!%p507_p3)
}
 0x15a   :  { %315 = dma.vmem_to_hbm [thread:$0]  %s313_s14, 128, %s629_s6, [#allocation4]  }
 0x15b   :  { %515 = dma.done.wait [#allocation4], 128  }
 0x15c   :  { %516 = vsyncadd [#allocation4], 4294967168 }
 0x15d   :  { %319 = vsyncpa [#allocation3], 1 }
 0x15e   :  { %320 = vsyncpa [#allocation6], 1 }
 0x15f   :  { %321 = vsyncpa [#allocation4], 1 }

</bundles_post_ra>
